<compile_context>
chip_gen: v7x
topology: tpu7x:2x2x1
jax: 0.10.0
libtpu: 0.0.40
codegen_flags: <defaults>
</compile_context>

<pallas_src>
import numpy as np
import jax
import jax.numpy as jnp
from jax import lax
from jax.experimental import pallas as pl
from jax.experimental.pallas import tpu as pltpu


# ---------------------------------------------------------------------------
# Kernel 1: concat + projection head (Linear -> ReLU -> Linear) + L2 normalize.
# Emits both (2N, C) rows (for the row / positive tiles) and the lane-dense
# transposed (C, 2N) layout used as the resident RHS of the similarity matmul.
# ---------------------------------------------------------------------------
def _project_normalize_kernel(aa_ref, bb_ref, w1_ref, b1_ref, w2_ref, b2_ref,
                              fn_ref, fnt_ref):
    x = jnp.concatenate([aa_ref[...], bb_ref[...]], axis=0).astype(jnp.float32)
    h = jnp.dot(x, w1_ref[...], preferred_element_type=jnp.float32) + b1_ref[...]
    h = jnp.maximum(h, 0.0)                                          # ReLU
    f = jnp.dot(h, w2_ref[...], preferred_element_type=jnp.float32) + b2_ref[...]
    # F.normalize(dim=1, eps=1e-12): x / max(||x||, eps) == x * rsqrt(max(||x||^2, eps^2))
    n2 = jnp.sum(f * f, axis=-1, keepdims=True)                      # (2N, 1)
    inv = lax.rsqrt(jnp.maximum(n2, 1e-24))                          # EUP, per row
    fn = f * inv
    fn_ref[...] = fn                                                 # (2N, C)
    fnt_ref[...] = fn.T                                              # (C, 2N) lane-dense


# ---------------------------------------------------------------------------
# Kernel 2: row-tiled NT-Xent (InfoNCE + CrossEntropy, label = positive pair).
# All kernel constants are Python scalars (jaxpr literals) — no captured consts.
# ---------------------------------------------------------------------------
def _make_ntxent_kernel(two_n: int, tm: int, inv_temp: float, contiguous_pos: bool):
    n_pos = two_n // 2

    def body(blk, rows, feats_t, pos_rows):
        rows_s = rows * inv_temp                                     # fold 1/T into LHS
        # (tm, C) @ (C, 2N) on the MXU, f32 accumulation -> scaled logits.
        z = jnp.dot(rows_s, feats_t, preferred_element_type=jnp.float32)
        # |z| <= inv_temp (normalized rows) -> constant-shift logsumexp, no max.
        e = jnp.exp(z - inv_temp)                                    # (tm, 2N), EUP
        col = lax.broadcasted_iota(jnp.int32, (tm, two_n), 1)
        row = lax.broadcasted_iota(jnp.int32, (tm, two_n), 0) + blk * tm
        e = jnp.where(col == row, 0.0, e)                            # drop diagonal exactly
        lse = inv_temp + jnp.log(jnp.sum(e, axis=-1, keepdims=True)) # one 2N-wide reduce
        if contiguous_pos:
            # Positive logit via a C-wide dot against the contiguous positive tile.
            pos = jnp.sum(rows_s * pos_rows, axis=-1, keepdims=True)
        else:
            pos_col = jnp.where(row < n_pos, row + n_pos, row - n_pos)
            pos = jnp.sum(jnp.where(col == pos_col, z, 0.0), axis=-1, keepdims=True)
        return lse - pos                                             # per-row CE(label=0)

    if contiguous_pos:
        def kernel(rows_ref, pos_ref, feats_t_ref, loss_ref):
            loss_ref[...] = body(pl.program_id(0), rows_ref[...],
                                 feats_t_ref[...], pos_ref[...])
    else:
        def kernel(rows_ref, feats_t_ref, loss_ref):
            loss_ref[...] = body(pl.program_id(0), rows_ref[...],
                                 feats_t_ref[...], None)
    return kernel


def _pos_index_map(half_blk: int, nblk: int):
    def idx(i):
        return ((i + half_blk) % nblk, 0)
    return idx


def _pick_row_tile(n_half: int, two_n: int, row_tile: int):
    """Largest multiple of 8 that divides N (contiguous positive tile, even nblk);
    fall back to a divisor of 2N, then monolithic."""
    for d in range(min(row_tile, n_half), 0, -1):
        if n_half % d == 0 and d % 8 == 0:
            return d, True
    for d in range(min(row_tile, two_n), 0, -1):
        if two_n % d == 0 and d % 8 == 0:
            return d, False
    return two_n, False


def _padded_f32_bytes(rows: int, cols: int) -> int:
    """Physical VMEM footprint of an f32 (rows, cols) array padded to (8,128) tiles."""
    return ((rows + 7) // 8) * 8 * ((cols + 127) // 128) * 128 * 4


# ---------------------------------------------------------------------------
# Plain-JAX glue: PyTorch-exact AdaptiveAvgPool3d + feature rearrange
# ---------------------------------------------------------------------------
def _adaptive_pool_matrix(in_size: int, out_size: int) -> jnp.ndarray:
    mat = np.zeros((out_size, in_size), dtype=np.float32)
    for i in range(out_size):
        start = (i * in_size) // out_size
        end = ((i + 1) * in_size + out_size - 1) // out_size          # ceil
        mat[i, start:end] = 1.0 / (end - start)
    return jnp.asarray(mat)


def _adaptive_avg_pool3d(x: jnp.ndarray, s: int) -> jnp.ndarray:
    _, _, d, h, w = x.shape
    ad = _adaptive_pool_matrix(d, s)
    ah = _adaptive_pool_matrix(h, s)
    aw = _adaptive_pool_matrix(w, s)
    return jnp.einsum('id,jh,kw,bcdhw->bcijk', ad, ah, aw, x)


def _region_features(p: jnp.ndarray, s: int) -> jnp.ndarray:
    b, c = p.shape[0], p.shape[1]
    pooled = _adaptive_avg_pool3d(p, s)                              # (B, C, S, S, S)
    # view(B, C, S^3).transpose(2, 1).flatten(0, 1)  ->  (B*S^3, C)
    return pooled.reshape(b, c, -1).transpose(0, 2, 1).reshape(-1, c)


# ---------------------------------------------------------------------------
# Full forward: RegionLoss_3D_cos
# ---------------------------------------------------------------------------
def region_loss_3d_cos(p1, p2, params, spatial_size, temperature=0.1, row_tile=128):
    w1, b1, w2, b2 = params                                          # (in, out) layout
    c = p1.shape[1]

    aa = _region_features(p1, spatial_size)                          # (N, C)
    bb = _region_features(p2, spatial_size)                          # (N, C)
    n_half = aa.shape[0]
    two_n = 2 * n_half

    # --- kernel 1: concat + project head + normalize (+ lane-dense transpose) ---
    fn, fn_t = pl.pallas_call(
        _project_normalize_kernel,
        out_shape=(jax.ShapeDtypeStruct((two_n, c), jnp.float32),
                   jax.ShapeDtypeStruct((c, two_n), jnp.float32)),
        in_specs=[pl.BlockSpec(memory_space=pltpu.MemorySpace.VMEM)] * 6,
        out_specs=(pl.BlockSpec(memory_space=pltpu.MemorySpace.VMEM),
                   pl.BlockSpec(memory_space=pltpu.MemorySpace.VMEM)),
    )(aa, bb,
      w1.astype(jnp.float32), b1.reshape(1, c).astype(jnp.float32),
      w2.astype(jnp.float32), b2.reshape(1, c).astype(jnp.float32))

    # --- kernel 2: row-tiled NT-Xent -------------------------------------------
    tm, contiguous_pos = _pick_row_tile(n_half, two_n, row_tile)
    nblk = two_n // tm
    inv_temp = 1.0 / float(temperature)
    kernel = _make_ntxent_kernel(two_n, tm, inv_temp, contiguous_pos)

    # VMEM budget: (8,128)-padded, double-buffered pipeline operands + the
    # (tm, 2N) logits/exp slab, capped by this chip's actual VMEM capacity.
    n_row_inputs = 2 if contiguous_pos else 1
    vmem_bytes = (2 * _padded_f32_bytes(c, two_n)                    # resident feats_t
                  + 2 * n_row_inputs * _padded_f32_bytes(tm, c)      # row (+ positive) tiles
                  + 2 * _padded_f32_bytes(tm, 1)                     # per-row loss tile
                  + 3 * _padded_f32_bytes(tm, two_n)                 # logits / exp slab
                  + (2 << 20))                                       # headroom
    try:
        vmem_cap = int(pltpu.get_tpu_info().vmem_capacity_bytes)
    except Exception:
        vmem_cap = 64 * 2**20                                        # conservative (v7x)
    vmem_limit = int(max(4 * 2**20, min(vmem_bytes, vmem_cap - 2 * 2**20)))

    cost = pl.CostEstimate(
        flops=2 * two_n * two_n * c + 6 * two_n * two_n,
        transcendentals=two_n * two_n + two_n,
        bytes_accessed=4 * ((n_row_inputs + 1) * two_n * c + two_n * c + two_n))

    if contiguous_pos:
        half_blk = n_half // tm                                      # == nblk // 2
        in_specs = [pl.BlockSpec((tm, c), lambda i: (i, 0)),         # row tile
                    pl.BlockSpec((tm, c), _pos_index_map(half_blk, nblk)),  # positive tile
                    pl.BlockSpec((c, two_n), lambda i: (0, 0))]      # resident features^T
        operands = (fn, fn, fn_t)
    else:
        in_specs = [pl.BlockSpec((tm, c), lambda i: (i, 0)),
                    pl.BlockSpec((c, two_n), lambda i: (0, 0))]
        operands = (fn, fn_t)

    per_row = pl.pallas_call(
        kernel,
        grid=(nblk,),
        out_shape=jax.ShapeDtypeStruct((two_n, 1), jnp.float32),
        in_specs=in_specs,
        out_specs=pl.BlockSpec((tm, 1), lambda i: (i, 0)),
        compiler_params=pltpu.CompilerParams(
            dimension_semantics=("parallel",),
            vmem_limit_bytes=vmem_limit),
        cost_estimate=cost,
    )(*operands)

    return jnp.mean(per_row)   # CrossEntropyLoss default reduction='mean' over 2N rows


# ---------------------------------------------------------------------------
# Pure-JAX reference (PyTorch-faithful math) for correctness check
# ---------------------------------------------------------------------------
def _reference(p1, p2, params, spatial_size, temperature=0.1):
    w1, b1, w2, b2 = params
    aa = _region_features(p1, spatial_size)
    bb = _region_features(p2, spatial_size)
    mm = jnp.concatenate([aa, bb], axis=0)
    f = jnp.maximum(mm @ w1 + b1, 0.0) @ w2 + b2
    nrm = jnp.sqrt(jnp.sum(f * f, axis=1, keepdims=True))
    fn = f / jnp.maximum(nrm, 1e-12)                                 # F.normalize
    two_n = fn.shape[0]
    n = two_n // 2
    z = (fn @ fn.T) / temperature
    idx = jnp.arange(two_n)
    pos = z[idx, (idx + n) % two_n]
    zm = jnp.where(jnp.eye(two_n, dtype=bool), -1e30, z)
    m = jnp.max(zm, axis=1)
    lse = m + jnp.log(jnp.sum(jnp.exp(zm - m[:, None]), axis=1))
    return jnp.mean(lse - pos)


if __name__ == "__main__":
    key = jax.random.PRNGKey(0)
    k = jax.random.split(key, 6)

    # C must be 16 (size_c of the project head in the original module).
    B, C, D, H, W = 2, 16, 8, 8, 8
    SPATIAL = 4            # -> N = B * 4^3 = 128 region features, 2N = 256 rows
    TEMPERATURE = 0.1

    p1 = jax.random.normal(k[0], (B, C, D, H, W), dtype=jnp.float32)
    p2 = jax.random.normal(k[1], (B, C, D, H, W), dtype=jnp.float32)

    # project_head parameters, (in, out) layout (== nn.Linear weight transposed)
    scale = 1.0 / float(np.sqrt(C))
    w1 = jax.random.uniform(k[2], (C, C), jnp.float32, -scale, scale)
    b1 = jax.random.uniform(k[3], (C,), jnp.float32, -scale, scale)
    w2 = jax.random.uniform(k[4], (C, C), jnp.float32, -scale, scale)
    b2 = jax.random.uniform(k[5], (C,), jnp.float32, -scale, scale)
    params = (w1, b1, w2, b2)

    loss = jax.block_until_ready(
        region_loss_3d_cos(p1, p2, params, SPATIAL, temperature=TEMPERATURE))
    ref = jax.block_until_ready(
        _reference(p1, p2, params, SPATIAL, temperature=TEMPERATURE))

    np.testing.assert_allclose(np.asarray(loss), np.asarray(ref),
                               rtol=2e-3, atol=2e-3)
    print("KERNEL_OK")
</pallas_src>

<mosaic_0001>
module attributes {stable_mosaic.version = 11 : i64} {
  func.func @_project_normalize_kernel(%arg0: memref<128x16xf32, #tpu.memory_space<vmem>>, %arg1: memref<128x16xf32, #tpu.memory_space<vmem>>, %arg2: memref<16x16xf32, #tpu.memory_space<vmem>>, %arg3: memref<1x16xf32, #tpu.memory_space<vmem>>, %arg4: memref<16x16xf32, #tpu.memory_space<vmem>>, %arg5: memref<1x16xf32, #tpu.memory_space<vmem>>, %arg6: memref<256x16xf32, #tpu.memory_space<vmem>>, %arg7: memref<16x256xf32, #tpu.memory_space<vmem>>) attributes {dimension_semantics = [], scalar_prefetch = 0 : i64, scratch_operands = 0 : i64, tpu.core_type = #tpu.core_type<tc>} {
    %c0 = arith.constant 0 : index
    %c0_0 = arith.constant 0 : index
    %0 = vector.load %arg0[%c0, %c0_0] : memref<128x16xf32, #tpu.memory_space<vmem>>, vector<128x16xf32>
    %c0_1 = arith.constant 0 : index
    %c0_2 = arith.constant 0 : index
    %1 = vector.load %arg1[%c0_1, %c0_2] : memref<128x16xf32, #tpu.memory_space<vmem>>, vector<128x16xf32>
    %2 = tpu.concatenate %0, %1 in 0 : vector<128x16xf32>, vector<128x16xf32> -> vector<256x16xf32>
    %c0_3 = arith.constant 0 : index
    %c0_4 = arith.constant 0 : index
    %3 = vector.load %arg2[%c0_3, %c0_4] : memref<16x16xf32, #tpu.memory_space<vmem>>, vector<16x16xf32>
    %cst = arith.constant dense<0.000000e+00> : vector<256x16xf32>
    %4 = tpu.matmul %2, %3, %cst {dimension_numbers = #tpu.dot_dimension_numbers<[1], [0], [0], [1], [0, 0, 1, 1], [], []>} : vector<256x16xf32>, vector<16x16xf32>, vector<256x16xf32> -> vector<256x16xf32>
    %c0_5 = arith.constant 0 : index
    %c0_6 = arith.constant 0 : index
    %5 = vector.load %arg3[%c0_5, %c0_6] : memref<1x16xf32, #tpu.memory_space<vmem>>, vector<1x16xf32>
    %6 = vector.broadcast %5 : vector<1x16xf32> to vector<256x16xf32>
    %7 = arith.addf %4, %6 : vector<256x16xf32>
    %cst_7 = arith.constant 0.000000e+00 : f32
    %8 = vector.broadcast %cst_7 : f32 to vector<256x16xf32>
    %9 = arith.maximumf %7, %8 : vector<256x16xf32>
    %c0_8 = arith.constant 0 : index
    %c0_9 = arith.constant 0 : index
    %10 = vector.load %arg4[%c0_8, %c0_9] : memref<16x16xf32, #tpu.memory_space<vmem>>, vector<16x16xf32>
    %cst_10 = arith.constant dense<0.000000e+00> : vector<256x16xf32>
    %11 = tpu.matmul %9, %10, %cst_10 {dimension_numbers = #tpu.dot_dimension_numbers<[1], [0], [0], [1], [0, 0, 1, 1], [], []>} : vector<256x16xf32>, vector<16x16xf32>, vector<256x16xf32> -> vector<256x16xf32>
    %c0_11 = arith.constant 0 : index
    %c0_12 = arith.constant 0 : index
    %12 = vector.load %arg5[%c0_11, %c0_12] : memref<1x16xf32, #tpu.memory_space<vmem>>, vector<1x16xf32>
    %13 = vector.broadcast %12 : vector<1x16xf32> to vector<256x16xf32>
    %14 = arith.addf %11, %13 : vector<256x16xf32>
    %15 = arith.mulf %14, %14 : vector<256x16xf32>
    %cst_13 = arith.constant dense<0.000000e+00> : vector<256xf32>
    %16 = vector.multi_reduction <add>, %15, %cst_13 [1] : vector<256x16xf32> to vector<256xf32>
    %17 = vector.shape_cast %16 : vector<256xf32> to vector<256x1xf32>
    %cst_14 = arith.constant 1.000000e-24 : f32
    %18 = vector.broadcast %cst_14 : f32 to vector<256x1xf32>
    %19 = arith.maximumf %17, %18 : vector<256x1xf32>
    %20 = math.rsqrt %19 : vector<256x1xf32>
    %21 = vector.broadcast %20 : vector<256x1xf32> to vector<256x16xf32>
    %22 = arith.mulf %14, %21 : vector<256x16xf32>
    %c0_15 = arith.constant 0 : index
    %c0_16 = arith.constant 0 : index
    %23 = vector.load %arg6[%c0_15, %c0_16] : memref<256x16xf32, #tpu.memory_space<vmem>>, vector<256x16xf32>
    tpu.vector_store %arg6[%c0_15, %c0_16], %22 {strides = array<i32>} : memref<256x16xf32, #tpu.memory_space<vmem>>, vector<256x16xf32>,
    %24 = tpu.transpose %22, [1, 0] : vector<256x16xf32> -> vector<16x256xf32>
    %c0_17 = arith.constant 0 : index
    %c0_18 = arith.constant 0 : index
    %25 = vector.load %arg7[%c0_17, %c0_18] : memref<16x256xf32, #tpu.memory_space<vmem>>, vector<16x256xf32>
    tpu.vector_store %arg7[%c0_17, %c0_18], %24 {strides = array<i32>} : memref<16x256xf32, #tpu.memory_space<vmem>>, vector<16x256xf32>,
    return
  }
}

</mosaic_0001>

<bundles_post_ra>
// kernel: tpu_custom_call.1
= control target key start
LH: loop header
LB: loop body
LE: loop exit
PB: predicated region body
PF: predicated region fallthrough
CT: control target
= control target key end

     0   :  { %vm67_vm0 = vcmask 130048   ;;  %s2068_s0 = inlined_call_operand.vmem [shape: f32[128,16], index: 0, kind: input, shape index: {}]   ;;  %s2069_s1 = inlined_call_operand.vmem [shape: f32[128,16], index: 1, kind: input, shape index: {}]   ;;  %s2070_s2 = inlined_call_operand.vmem [shape: f32[16,16], index: 2, kind: input, shape index: {}]   ;;  %s2071_s3 = inlined_call_operand.vmem [shape: f32[1,16], index: 3, kind: input, shape index: {}]   ;;  %s2072_s4 = inlined_call_operand.vmem [shape: f32[16,16], index: 4, kind: input, shape index: {}]   ;;  %s2073_s5 = inlined_call_operand.vmem [shape: f32[1,16], index: 5, kind: input, shape index: {}]   ;;  %s2074_s6 = inlined_call_operand.vmem [shape: f32[256,16], index: 6, kind: output, shape index: {0}]   ;;  %s2075_s7 = inlined_call_operand.hbm [shape: f32[16,256], index: 7, kind: output, shape index: {1}]  }
   0x1   :  { %v58_v0 = vld [vmem:[%s2070_s2] sm:$0xff]  ;;  %v59_v1 = vld [vmem:[%s2070_s2 + $0x8] sm:$0xff]  ;;  %v28_v5 = vld [vmem:[%s2068_s0 + $0x10] sm:$0xff] }
   0x2   :  { %v26_v2 = vld [vmem:[%s2068_s0] sm:$0xff]  ;;  %v1333_v3 = vpack.c.bf16 %v59_v1, %v58_v0  ;;  %v27_v4 = vld [vmem:[%s2068_s0 + $0x8] sm:$0xff]  ;;  %v29_v6 = vld [vmem:[%s2068_s0 + $0x18] sm:$0xff] }
   0x3   :  { %1233 = vmatprep.mubr.msk.f32.mxu0 %vm67_vm0, %v26_v2  ;;  %v30_v7 = vld [vmem:[%s2068_s0 + $0x20] sm:$0xff] }
   0x4   :  { %1334 = vmatprep.subr.bf16.mxu0 %v1333_v3 }
   0x5   :  { %1336 = vmatpush3.bf16.msra.mxu0 %v1333_v3 }
   0x8   :  { %1234 = vmatmul.mubr.msk.f32.vlgmr.msra.gmra.mrb[0].mxu0 %vm67_vm0, %v27_v4 }
   0x9   :  { %1236 = vmatprep.mubr.msk.f32.mxu0 %vm67_vm0, %v28_v5 }
   0xc   :  { %1237 = vmatmul.mubr.msk.f32.gmra.mrb[2].mxu0 %vm67_vm0, %v29_v6 }
   0xd   :  { %13 = vsyncpa [#allocation3], 0  ;;  %1239 = vmatprep.mubr.msk.f32.mxu0 %vm67_vm0, %v30_v7  ;;  %v31_v8 = vld [vmem:[%s2068_s0 + $0x28] sm:$0xff]  ;;  %v32_v9 = vld [vmem:[%s2068_s0 + $0x30] sm:$0xff]  ;;  %s1432_s28 = smov [#allocation2]  }
   0xe   :  { %v33_v10 = vld [vmem:[%s2068_s0 + $0x38] sm:$0xff]  ;;  %v34_v11 = vld [vmem:[%s2068_s0 + $0x40] sm:$0xff]  ;;  %v35_v12 = vld [vmem:[%s2068_s0 + $0x48] sm:$0xff]  ;;  %s1082_s29 = sshll.u32 %s1432_s28, 4  ;;  %s1083_s29 = int_to_ptr.vmem [resolvable:$true] %s1082_s29 }
   0xf   :  { %v36_v13 = vld [vmem:[%s2068_s0 + $0x50] sm:$0xff]  ;;  %v37_v14 = vld [vmem:[%s2068_s0 + $0x58] sm:$0xff]  ;;  %v38_v15 = vld [vmem:[%s2068_s0 + $0x60] sm:$0xff]  ;;  %s1408_s30 = scalar_lea.vmem %s1083_s29, 512  ;;  %p1413_p1 = scmp.lt.s32.totalorder %s1083_s29, %s1083_s29 }
  0x10   :  { %1240 = vmatmul.mubr.msk.f32.gmra.mrb[4].mxu0 %vm67_vm0, %v31_v8  ;;  %v39_v16 = vld [vmem:[%s2068_s0 + $0x68] sm:$0xff]  ;;  %v40_v17 = vld [vmem:[%s2068_s0 + $0x70] sm:$0xff]  ;;  %v41_v18 = vld [vmem:[%s2068_s0 + $0x78] sm:$0xff]  ;;  %p1409_p0 = scmp.ne.s32.totalorder %s1083_s29, %s1408_s30  ;;  %p1414_p2 = scmp.lt.s32.totalorder %s1408_s30, %s1408_s30 }
  0x11   :  { %1242 = vmatprep.mubr.msk.f32.mxu0 %vm67_vm0, %v32_v9  ;;  %v42_v19 = vld [vmem:[%s2069_s1] sm:$0xff]  ;;  %v43_v20 = vld [vmem:[%s2069_s1 + $0x8] sm:$0xff]  ;;  %v44_v21 = vld [vmem:[%s2069_s1 + $0x10] sm:$0xff] }
  0x12   :  { %v45_v22 = vld [vmem:[%s2069_s1 + $0x18] sm:$0xff]  ;;  %v46_v23 = vld [vmem:[%s2069_s1 + $0x20] sm:$0xff]  ;;  %v47_v24 = vld [vmem:[%s2069_s1 + $0x28] sm:$0xff]  ;;  %p1415_p3 = por %p1414_p2, %p1413_p1 }
  0x13   :  { %v48_v25 = vld [vmem:[%s2069_s1 + $0x30] sm:$0xff]  ;;  %v49_v26 = vld [vmem:[%s2069_s1 + $0x38] sm:$0xff]  ;;  %v50_v27 = vld [vmem:[%s2069_s1 + $0x40] sm:$0xff] }
  0x14   :  { %1243 = vmatmul.mubr.msk.f32.gmra.mrb[6].mxu0 %vm67_vm0, %v33_v10  ;;  %v51_v28 = vld [vmem:[%s2069_s1 + $0x48] sm:$0xff]  ;;  %v52_v29 = vld [vmem:[%s2069_s1 + $0x50] sm:$0xff]  ;;  %v53_v30 = vld [vmem:[%s2069_s1 + $0x58] sm:$0xff]  ;;  %p1416_p4 = pnand %p1415_p3, %p1409_p0 }
  0x15   :  { %1245 = vmatprep.mubr.msk.f32.mxu0 %vm67_vm0, %v34_v11  ;;  %v54_v31 = vld [vmem:[%s2069_s1 + $0x60] sm:$0xff]  ;;  %v55_v32 = vld [vmem:[%s2069_s1 + $0x68] sm:$0xff]  ;;  %v56_v33 = vld [vmem:[%s2069_s1 + $0x70] sm:$0xff] }
  0x16   :  { %v57_v34 = vld [vmem:[%s2069_s1 + $0x78] sm:$0xff]  ;;  %v421_v35 = vld [vmem:[%s2072_s4] sm:$0xff]  ;;  %v422_v36 = vld [vmem:[%s2072_s4 + $0x8] sm:$0xff] }
  0x17   :  { %v1337_v37 = vpack.c.bf16 %v422_v36, %v421_v35  ;;  %v1618_v38 = vld [vmem:[%s2071_s3] ss:$0 sm:$0xff] }
  0x18   :  { %1246 = vmatmul.mubr.msk.f32.gmra.mrb[8].mxu0 %vm67_vm0, %v35_v12 }
  0x19   :  { %1248 = vmatprep.mubr.msk.f32.mxu0 %vm67_vm0, %v36_v13  ;;  %1338 = vmatprep.subr.bf16.mxu1 %v1337_v37 }
  0x1a   :  { %1340 = vmatpush3.bf16.msra.mxu1 %v1337_v37 }
  0x1c   :  { %1249 = vmatmul.mubr.msk.f32.gmra.mrb[10].mxu0 %vm67_vm0, %v37_v14 }
  0x1d   :  { %1251 = vmatprep.mubr.msk.f32.mxu0 %vm67_vm0, %v38_v15 }
  0x20   :  { %1252 = vmatmul.mubr.msk.f32.gmra.mrb[12].mxu0 %vm67_vm0, %v39_v16 }
  0x21   :  { %1254 = vmatprep.mubr.msk.f32.mxu0 %vm67_vm0, %v40_v17 }
  0x24   :  { %1255 = vmatmul.mubr.msk.f32.gmra.mrb[14].mxu0 %vm67_vm0, %v41_v18 }
  0x25   :  { %1257 = vmatprep.mubr.msk.f32.mxu0 %vm67_vm0, %v42_v19 }
  0x28   :  { %1258 = vmatmul.mubr.msk.f32.gmra.mrb[16].mxu0 %vm67_vm0, %v43_v20 }
  0x29   :  { %1260 = vmatprep.mubr.msk.f32.mxu0 %vm67_vm0, %v44_v21 }
  0x2c   :  { %1261 = vmatmul.mubr.msk.f32.gmra.mrb[18].mxu0 %vm67_vm0, %v45_v22 }
  0x2d   :  { %1263 = vmatprep.mubr.msk.f32.mxu0 %vm67_vm0, %v46_v23 }
  0x30   :  { %1264 = vmatmul.mubr.msk.f32.gmra.mrb[20].mxu0 %vm67_vm0, %v47_v24 }
  0x31   :  { %1266 = vmatprep.mubr.msk.f32.mxu0 %vm67_vm0, %v48_v25 }
  0x34   :  { %1267 = vmatmul.mubr.msk.f32.gmra.mrb[22].mxu0 %vm67_vm0, %v49_v26 }
  0x35   :  { %1269 = vmatprep.mubr.msk.f32.mxu0 %vm67_vm0, %v50_v27 }
  0x38   :  { %1270 = vmatmul.mubr.msk.f32.gmra.mrb[24].mxu0 %vm67_vm0, %v51_v28 }
  0x39   :  { %1272 = vmatprep.mubr.msk.f32.mxu0 %vm67_vm0, %v52_v29 }
  0x3c   :  { %1273 = vmatmul.mubr.msk.f32.gmra.mrb[26].mxu0 %vm67_vm0, %v53_v30 }
  0x3d   :  { %1275 = vmatprep.mubr.msk.f32.mxu0 %vm67_vm0, %v54_v31 }
  0x40   :  { %1276 = vmatmul.mubr.msk.f32.gmra.mrb[28].mxu0 %vm67_vm0, %v55_v32 }
  0x41   :  { %1278 = vmatprep.mubr.msk.f32.mxu0 %vm67_vm0, %v56_v33 }
  0x44   :  { %1279 = vmatmul.mubr.msk.f32.gmra.mrb[30].mxu0 %vm67_vm0, %v57_v34 }
  0xdb   :  { %v1235_v39 = vpop.f32.mrb[0].mxu0 }
  0xdc   :  { %v236_v40 = vadd.f32 %v1235_v39, %v1618_v38  ;;  %v230_v41 = vpop.f32.mrb[1].mxu0 }
  0xdd   :  { %v231_v42 = vadd.f32 %v1618_v38, %v230_v41 }
  0xde   :  { %v390_v45 = vmax.f32 %v236_v40, 0.0 }
  0xdf   :  { %v389_v43 = vmax.f32 %v231_v42, 0.0  ;;  %v1238_v44 = vpop.f32.mrb[2].mxu0 }
  0xe0   :  { %v246_v46 = vadd.f32 %v1238_v44, %v1618_v38  ;;  %v240_v47 = vpop.f32.mrb[3].mxu0 }
  0xe1   :  { %v241_v48 = vadd.f32 %v1618_v38, %v240_v47  ;;  %1285 = vmatprep.mubr.msk.f32.mxu1 %vm67_vm0, %v389_v43 }
  0xe2   :  { %v392_v49 = vmax.f32 %v246_v46, 0.0  ;;  %1286 = vmatmul.mubr.msk.f32.vlgmr.msra.gmra.mrb[0].mxu1 %vm67_vm0, %v390_v45 }
  0xe3   :  { %v391_v50 = vmax.f32 %v241_v48, 0.0  ;;  %v1241_v51 = vpop.f32.mrb[4].mxu0 }
  0xe4   :  { %v256_v52 = vadd.f32 %v1241_v51, %v1618_v38  ;;  %v250_v53 = vpop.f32.mrb[5].mxu0 }
  0xe5   :  { %v251_v54 = vadd.f32 %v1618_v38, %v250_v53  ;;  %1288 = vmatprep.mubr.msk.f32.mxu1 %vm67_vm0, %v391_v50 }
  0xe6   :  { %v394_v55 = vmax.f32 %v256_v52, 0.0  ;;  %1289 = vmatmul.mubr.msk.f32.gmra.mrb[2].mxu1 %vm67_vm0, %v392_v49 }
  0xe7   :  { %v393_v56 = vmax.f32 %v251_v54, 0.0  ;;  %v1244_v57 = vpop.f32.mrb[6].mxu0 }
  0xe8   :  { %v266_v58 = vadd.f32 %v1244_v57, %v1618_v38  ;;  %v260_v59 = vpop.f32.mrb[7].mxu0 }
  0xe9   :  { %v261_v60 = vadd.f32 %v1618_v38, %v260_v59  ;;  %1291 = vmatprep.mubr.msk.f32.mxu1 %vm67_vm0, %v393_v56 }
  0xea   :  { %v396_v61 = vmax.f32 %v266_v58, 0.0  ;;  %1292 = vmatmul.mubr.msk.f32.gmra.mrb[4].mxu1 %vm67_vm0, %v394_v55 }
  0xeb   :  { %v395_v62 = vmax.f32 %v261_v60, 0.0  ;;  %v1247_v63 = vpop.f32.mrb[8].mxu0 }
  0xec   :  { %v276_v0 = vadd.f32 %v1247_v63, %v1618_v38  ;;  %v270_v1 = vpop.f32.mrb[9].mxu0 }
  0xed   :  { %v271_v2 = vadd.f32 %v1618_v38, %v270_v1  ;;  %1294 = vmatprep.mubr.msk.f32.mxu1 %vm67_vm0, %v395_v62 }
  0xee   :  { %v398_v3 = vmax.f32 %v276_v0, 0.0  ;;  %1295 = vmatmul.mubr.msk.f32.gmra.mrb[6].mxu1 %vm67_vm0, %v396_v61 }
  0xef   :  { %v397_v4 = vmax.f32 %v271_v2, 0.0  ;;  %v1250_v5 = vpop.f32.mrb[10].mxu0 }
  0xf0   :  { %v286_v6 = vadd.f32 %v1250_v5, %v1618_v38  ;;  %v280_v7 = vpop.f32.mrb[11].mxu0 }
  0xf1   :  { %v281_v8 = vadd.f32 %v1618_v38, %v280_v7  ;;  %1297 = vmatprep.mubr.msk.f32.mxu1 %vm67_vm0, %v397_v4 }
  0xf2   :  { %v400_v9 = vmax.f32 %v286_v6, 0.0  ;;  %1298 = vmatmul.mubr.msk.f32.gmra.mrb[8].mxu1 %vm67_vm0, %v398_v3 }
  0xf3   :  { %v399_v10 = vmax.f32 %v281_v8, 0.0  ;;  %v1253_v11 = vpop.f32.mrb[12].mxu0  ;;  %v1687_v8 = vld [vmem:[%s2073_s5] ss:$0 sm:$0xff] }
  0xf4   :  { %v296_v12 = vadd.f32 %v1253_v11, %v1618_v38  ;;  %v290_v13 = vpop.f32.mrb[13].mxu0 }
  0xf5   :  { %v291_v14 = vadd.f32 %v1618_v38, %v290_v13  ;;  %1300 = vmatprep.mubr.msk.f32.mxu1 %vm67_vm0, %v399_v10 }
  0xf6   :  { %v402_v15 = vmax.f32 %v296_v12, 0.0  ;;  %1301 = vmatmul.mubr.msk.f32.gmra.mrb[10].mxu1 %vm67_vm0, %v400_v9 }
  0xf7   :  { %v401_v16 = vmax.f32 %v291_v14, 0.0  ;;  %v1256_v17 = vpop.f32.mrb[14].mxu0 }
  0xf8   :  { %v306_v18 = vadd.f32 %v1256_v17, %v1618_v38  ;;  %v300_v19 = vpop.f32.mrb[15].mxu0 }
  0xf9   :  { %v301_v20 = vadd.f32 %v1618_v38, %v300_v19  ;;  %1303 = vmatprep.mubr.msk.f32.mxu1 %vm67_vm0, %v401_v16 }
  0xfa   :  { %v404_v21 = vmax.f32 %v306_v18, 0.0  ;;  %1304 = vmatmul.mubr.msk.f32.gmra.mrb[12].mxu1 %vm67_vm0, %v402_v15 }
  0xfb   :  { %v403_v22 = vmax.f32 %v301_v20, 0.0  ;;  %v1259_v23 = vpop.f32.mrb[16].mxu0 }
  0xfc   :  { %v316_v24 = vadd.f32 %v1259_v23, %v1618_v38  ;;  %v310_v25 = vpop.f32.mrb[17].mxu0 }
  0xfd   :  { %v311_v26 = vadd.f32 %v1618_v38, %v310_v25  ;;  %1306 = vmatprep.mubr.msk.f32.mxu1 %vm67_vm0, %v403_v22 }
  0xfe   :  { %v406_v27 = vmax.f32 %v316_v24, 0.0  ;;  %1307 = vmatmul.mubr.msk.f32.gmra.mrb[14].mxu1 %vm67_vm0, %v404_v21 }
  0xff   :  { %v405_v28 = vmax.f32 %v311_v26, 0.0  ;;  %v1262_v29 = vpop.f32.mrb[18].mxu0 }
 0x100   :  { %v326_v30 = vadd.f32 %v1262_v29, %v1618_v38  ;;  %v320_v31 = vpop.f32.mrb[19].mxu0 }
 0x101   :  { %v321_v32 = vadd.f32 %v1618_v38, %v320_v31  ;;  %1309 = vmatprep.mubr.msk.f32.mxu1 %vm67_vm0, %v405_v28 }
 0x102   :  { %v408_v33 = vmax.f32 %v326_v30, 0.0  ;;  %1310 = vmatmul.mubr.msk.f32.gmra.mrb[16].mxu1 %vm67_vm0, %v406_v27 }
 0x103   :  { %v407_v34 = vmax.f32 %v321_v32, 0.0  ;;  %v1265_v35 = vpop.f32.mrb[20].mxu0 }
 0x104   :  { %v336_v36 = vadd.f32 %v1265_v35, %v1618_v38  ;;  %v330_v37 = vpop.f32.mrb[21].mxu0 }
 0x105   :  { %1312 = vmatprep.mubr.msk.f32.mxu1 %vm67_vm0, %v407_v34  ;;  %v331_v39 = vadd.f32 %v1618_v38, %v330_v37 }
 0x106   :  { %1313 = vmatmul.mubr.msk.f32.gmra.mrb[18].mxu1 %vm67_vm0, %v408_v33  ;;  %v410_v40 = vmax.f32 %v336_v36, 0.0 }
 0x107   :  { %v409_v41 = vmax.f32 %v331_v39, 0.0  ;;  %v1268_v42 = vpop.f32.mrb[22].mxu0 }
 0x108   :  { %v346_v43 = vadd.f32 %v1268_v42, %v1618_v38  ;;  %v340_v44 = vpop.f32.mrb[23].mxu0 }
 0x109   :  { %1315 = vmatprep.mubr.msk.f32.mxu1 %vm67_vm0, %v409_v41  ;;  %v341_v45 = vadd.f32 %v1618_v38, %v340_v44 }
 0x10a   :  { %1316 = vmatmul.mubr.msk.f32.gmra.mrb[20].mxu1 %vm67_vm0, %v410_v40  ;;  %v412_v46 = vmax.f32 %v346_v43, 0.0 }
 0x10b   :  { %v411_v47 = vmax.f32 %v341_v45, 0.0  ;;  %v1271_v48 = vpop.f32.mrb[24].mxu0 }
 0x10c   :  { %v356_v49 = vadd.f32 %v1271_v48, %v1618_v38  ;;  %v350_v50 = vpop.f32.mrb[25].mxu0 }
 0x10d   :  { %1318 = vmatprep.mubr.msk.f32.mxu1 %vm67_vm0, %v411_v47  ;;  %v351_v51 = vadd.f32 %v1618_v38, %v350_v50 }
 0x10e   :  { %1319 = vmatmul.mubr.msk.f32.gmra.mrb[22].mxu1 %vm67_vm0, %v412_v46  ;;  %v414_v52 = vmax.f32 %v356_v49, 0.0 }
 0x10f   :  { %v413_v53 = vmax.f32 %v351_v51, 0.0  ;;  %v1274_v54 = vpop.f32.mrb[26].mxu0 }
 0x110   :  { %v366_v55 = vadd.f32 %v1274_v54, %v1618_v38  ;;  %v360_v56 = vpop.f32.mrb[27].mxu0 }
 0x111   :  { %1321 = vmatprep.mubr.msk.f32.mxu1 %vm67_vm0, %v413_v53  ;;  %v361_v57 = vadd.f32 %v1618_v38, %v360_v56 }
 0x112   :  { %1322 = vmatmul.mubr.msk.f32.gmra.mrb[24].mxu1 %vm67_vm0, %v414_v52  ;;  %v416_v58 = vmax.f32 %v366_v55, 0.0 }
 0x113   :  { %v415_v59 = vmax.f32 %v361_v57, 0.0  ;;  %v1277_v60 = vpop.f32.mrb[28].mxu0 }
 0x114   :  { %v376_v61 = vadd.f32 %v1277_v60, %v1618_v38  ;;  %v370_v62 = vpop.f32.mrb[29].mxu0 }
 0x115   :  { %1324 = vmatprep.mubr.msk.f32.mxu1 %vm67_vm0, %v415_v59  ;;  %v371_v63 = vadd.f32 %v1618_v38, %v370_v62 }
 0x116   :  { %1325 = vmatmul.mubr.msk.f32.gmra.mrb[26].mxu1 %vm67_vm0, %v416_v58  ;;  %v418_v0 = vmax.f32 %v376_v61, 0.0 }
 0x117   :  { %v417_v1 = vmax.f32 %v371_v63, 0.0  ;;  %v1280_v2 = vpop.f32.mrb[30].mxu0 }
 0x118   :  { %v386_v3 = vadd.f32 %v1280_v2, %v1618_v38  ;;  %v380_v4 = vpop.f32.mrb[31].mxu0 }
 0x119   :  { %1327 = vmatprep.mubr.msk.f32.mxu1 %vm67_vm0, %v417_v1  ;;  %v381_v5 = vadd.f32 %v1618_v38, %v380_v4 }
 0x11a   :  { %1328 = vmatmul.mubr.msk.f32.gmra.mrb[28].mxu1 %vm67_vm0, %v418_v0  ;;  %v420_v6 = vmax.f32 %v386_v3, 0.0 }
 0x11b   :  { %v419_v7 = vmax.f32 %v381_v5, 0.0 }
 0x11d   :  { %1330 = vmatprep.mubr.msk.f32.mxu1 %vm67_vm0, %v419_v7 }
 0x11e   :  { %1331 = vmatmul.mubr.msk.f32.gmra.mrb[30].mxu1 %vm67_vm0, %v420_v6 }
 0x1b5   :  { %v1287_v9 = vpop.f32.mrb[0].mxu1 }
 0x1b6   :  { %v1690_v10 = vadd.f32 %v1287_v9, %v1687_v8  ;;  %v592_v11 = vpop.f32.mrb[1].mxu1 }
 0x1b7   :  { %v1693_v38 = vadd.f32 %v1687_v8, %v592_v11 }
 0x1b8   :  { %v752_v12 = vmul.f32 %v1690_v10, %v1690_v10 }
 0x1b9   :  { %v1290_v13 = vpop.f32.mrb[2].mxu1  ;;  %v751_v14 = vmul.f32 %v1693_v38, %v1693_v38 }
 0x1ba   :  { %v1700_v15 = vadd.f32 %v1290_v13, %v1687_v8  ;;  %v602_v16 = vpop.f32.mrb[3].mxu1  ;;  %v786_v17 = vsel %vm67_vm0, %v752_v12, 0.0 }
 0x1bb   :  { %v1704_v18 = vadd.f32 %v1687_v8, %v602_v16  ;;  %787 = vadd.xlane.f32.xlu1 %v786_v17  ;;  %v783_v19 = vsel %vm67_vm0, %v751_v14, 0.0 }
 0x1bc   :  { %784 = vadd.xlane.f32.xlu0 %v783_v19  ;;  %v754_v20 = vmul.f32 %v1700_v15, %v1700_v15 }
 0x1bd   :  { %v1293_v21 = vpop.f32.mrb[4].mxu1  ;;  %v753_v25 = vmul.f32 %v1704_v18, %v1704_v18 }
 0x1be   :  { %v612_v22 = vpop.f32.mrb[5].mxu1  ;;  %v792_v23 = vsel %vm67_vm0, %v754_v20, 0.0  ;;  %v1711_v24 = vadd.f32 %v1293_v21, %v1687_v8 }
 0x1bf   :  { %v1716_v28 = vadd.f32 %v1687_v8, %v612_v22  ;;  %v789_v29 = vsel %vm67_vm0, %v753_v25, 0.0 }
 0x1c0   :  { %793 = vadd.xlane.f32.xlu0 %v792_v23  ;;  %v756_v30 = vmul.f32 %v1711_v24, %v1711_v24 }
 0x1c1   :  { %v1296_v26 = vpop.f32.mrb[6].mxu1  ;;  %v755_v35 = vmul.f32 %v1716_v28, %v1716_v28 }
 0x1c2   :  { %v622_v27 = vpop.f32.mrb[7].mxu1  ;;  %v1722_v33 = vadd.f32 %v1296_v26, %v1687_v8  ;;  %v798_v34 = vsel %vm67_vm0, %v756_v30, 0.0 }
 0x1c3   :  { %v1728_v39 = vadd.f32 %v1687_v8, %v622_v27  ;;  %v795_v40 = vsel %vm67_vm0, %v755_v35, 0.0 }
 0x1c4   :  { %790 = vadd.xlane.f32.xlu0 %v789_v29  ;;  %v758_v41 = vmul.f32 %v1722_v33, %v1722_v33 }
 0x1c5   :  { %v1299_v31 = vpop.f32.mrb[8].mxu1  ;;  %v757_v46 = vmul.f32 %v1728_v39, %v1728_v39 }
 0x1c6   :  { %v632_v32 = vpop.f32.mrb[9].mxu1  ;;  %v1734_v44 = vadd.f32 %v1299_v31, %v1687_v8  ;;  %v804_v45 = vsel %vm67_vm0, %v758_v41, 0.0 }
 0x1c7   :  { %v1742_v49 = vadd.f32 %v1687_v8, %v632_v32  ;;  %v801_v50 = vsel %vm67_vm0, %v757_v46, 0.0 }
 0x1c8   :  { %799 = vadd.xlane.f32.xlu0 %v798_v34  ;;  %v760_v51 = vmul.f32 %v1734_v44, %v1734_v44 }
 0x1c9   :  { %v1302_v36 = vpop.f32.mrb[10].mxu1  ;;  %v759_v57 = vmul.f32 %v1742_v49, %v1742_v49 }
 0x1ca   :  { %v642_v37 = vpop.f32.mrb[11].mxu1  ;;  %v1751_v55 = vadd.f32 %v1302_v36, %v1687_v8  ;;  %v810_v56 = vsel %vm67_vm0, %v760_v51, 0.0 }
 0x1cb   :  { %v1763_v63 = vadd.f32 %v1687_v8, %v642_v37  ;;  %v807_v0 = vsel %vm67_vm0, %v759_v57, 0.0 }
 0x1cc   :  { %796 = vadd.xlane.f32.xlu0 %v795_v40  ;;  %v762_v2 = vmul.f32 %v1751_v55, %v1751_v55 }
 0x1cd   :  { %v1305_v42 = vpop.f32.mrb[12].mxu1  ;;  %v761_v13 = vmul.f32 %v1763_v63, %v1763_v63 }
 0x1ce   :  { %v652_v43 = vpop.f32.mrb[13].mxu1  ;;  %v816_v12 = vsel %vm67_vm0, %v762_v2, 0.0  ;;  %v1804_v31 = vadd.f32 %v1305_v42, %v1687_v8 }
 0x1cf   :  { %v1780_v11 = vadd.f32 %v1687_v8, %v652_v43  ;;  %v813_v22 = vsel %vm67_vm0, %v761_v13, 0.0 }
 0x1d0   :  { %805 = vadd.xlane.f32.xlu0 %v804_v45 }
 0x1d1   :  { %v1739_v47 = vpop.f32.mrb[14].mxu1  ;;  %v763_v23 = vmul.f32 %v1780_v11, %v1780_v11 }
 0x1d2   :  { %v662_v48 = vpop.f32.mrb[15].mxu1 }
 0x1d3   :  { %v819_v32 = vsel %vm67_vm0, %v763_v23, 0.0  ;;  %v1822_v45 = vadd.f32 %v1687_v8, %v662_v48 }
 0x1d4   :  { %802 = vadd.xlane.f32.xlu0 %v801_v50  ;;  %v764_v50 = vmul.f32 %v1804_v31, %v1804_v31 }
 0x1d5   :  { %v1311_v52 = vpop.f32.mrb[16].mxu1 }
 0x1d6   :  { %v1748_v53 = vadd.f32 %v1311_v52, %v1687_v8  ;;  %v672_v54 = vpop.f32.mrb[17].mxu1 }
 0x1d7   :  { %v1792_v21 = vadd.f32 %v1687_v8, %v672_v54 }
 0x1d8   :  { %811 = vadd.xlane.f32.xlu0 %v810_v56  ;;  %v768_v58 = vmul.f32 %v1748_v53, %v1748_v53 }
 0x1d9   :  { %v1314_v59 = vpop.f32.mrb[18].mxu1  ;;  %v767_v34 = vmul.f32 %v1792_v21, %v1792_v21 }
 0x1da   :  { %v1759_v60 = vadd.f32 %v1314_v59, %v1687_v8  ;;  %v834_v61 = vsel %vm67_vm0, %v768_v58, 0.0  ;;  %v682_v62 = vpop.f32.mrb[19].mxu1  ;;  %v1841_v59 = vadd.f32 %v1739_v47, %v1687_v8 }
 0x1db   :  { %835 = vadd.xlane.f32.xlu1 %v834_v61  ;;  %v1767_v1 = vadd.f32 %v1687_v8, %v682_v62  ;;  %v831_v46 = vsel %vm67_vm0, %v767_v34, 0.0  ;;  %v822_v61 = vsel %vm67_vm0, %v764_v50, 0.0  ;;  %v765_v62 = vmul.f32 %v1822_v45, %v1822_v45 }
 0x1dc   :  { %808 = vadd.xlane.f32.xlu0 %v807_v0  ;;  %v770_v3 = vmul.f32 %v1759_v60, %v1759_v60 }
 0x1dd   :  { %v1317_v4 = vpop.f32.mrb[20].mxu1  ;;  %v769_v5 = vmul.f32 %v1767_v1, %v1767_v1 }
 0x1de   :  { %v840_v6 = vsel %vm67_vm0, %v770_v3, 0.0  ;;  %v1777_v7 = vadd.f32 %v1317_v4, %v1687_v8  ;;  %v692_v9 = vpop.f32.mrb[21].mxu1 }
 0x1df   :  { %841 = vadd.xlane.f32.xlu1 %v840_v6  ;;  %v837_v14 = vsel %vm67_vm0, %v769_v5, 0.0  ;;  %v1787_v16 = vadd.f32 %v1687_v8, %v692_v9  ;;  %v825_v6 = vsel %vm67_vm0, %v765_v62, 0.0  ;;  %v766_v9 = vmul.f32 %v1841_v59, %v1841_v59 }
 0x1e0   :  { %817 = vadd.xlane.f32.xlu0 %v816_v12  ;;  %v772_v17 = vmul.f32 %v1777_v7, %v1777_v7 }
 0x1e1   :  { %v1320_v19 = vpop.f32.mrb[22].mxu1  ;;  %v771_v27 = vmul.f32 %v1787_v16, %v1787_v16 }
 0x1e2   :  { %v702_v20 = vpop.f32.mrb[23].mxu1  ;;  %v846_v25 = vsel %vm67_vm0, %v772_v17, 0.0  ;;  %v1799_v26 = vadd.f32 %v1320_v19, %v1687_v8  ;;  %v828_v17 = vsel %vm67_vm0, %v766_v9, 0.0 }
 0x1e3   :  { %838 = vadd.xlane.f32.xlu1 %v837_v14  ;;  %v843_v36 = vsel %vm67_vm0, %v771_v27, 0.0  ;;  %v1814_v37 = vadd.f32 %v1687_v8, %v702_v20 }
 0x1e4   :  { %814 = vadd.xlane.f32.xlu0 %v813_v22  ;;  %v774_v40 = vmul.f32 %v1799_v26, %v1799_v26 }
 0x1e5   :  { %v1323_v29 = vpop.f32.mrb[24].mxu1  ;;  %v773_v56 = vmul.f32 %v1814_v37, %v1814_v37 }
 0x1e6   :  { %v712_v30 = vpop.f32.mrb[25].mxu1  ;;  %v852_v52 = vsel %vm67_vm0, %v774_v40, 0.0  ;;  %v1832_v54 = vadd.f32 %v1323_v29, %v1687_v8 }
 0x1e7   :  { %847 = vadd.xlane.f32.xlu1 %v846_v25  ;;  %v1810_v35 = vadd.f32 %v1687_v8, %v712_v30  ;;  %v849_v2 = vsel %vm67_vm0, %v773_v56, 0.0 }
 0x1e8   :  { %820 = vadd.xlane.f32.xlu0 %v819_v32  ;;  %v776_v3 = vmul.f32 %v1832_v54, %v1832_v54 }
 0x1e9   :  { %v1326_v41 = vpop.f32.mrb[26].mxu1  ;;  %v775_v14 = vmul.f32 %v1810_v35, %v1810_v35 }
 0x1ea   :  { %v1819_v42 = vadd.f32 %v1326_v41, %v1687_v8  ;;  %v722_v43 = vpop.f32.mrb[27].mxu1  ;;  %v858_v13 = vsel %vm67_vm0, %v776_v3, 0.0 }
 0x1eb   :  { %844 = vadd.xlane.f32.xlu1 %v843_v36  ;;  %v1828_v51 = vadd.f32 %v1687_v8, %v722_v43  ;;  %v855_v19 = vsel %vm67_vm0, %v775_v14, 0.0 }
 0x1ec   :  { %832 = vadd.xlane.f32.xlu0 %v831_v46  ;;  %v778_v20 = vmul.f32 %v1819_v42, %v1819_v42 }
 0x1ed   :  { %v1329_v48 = vpop.f32.mrb[28].mxu1 }
 0x1ee   :  { %v1837_v57 = vadd.f32 %v1329_v48, %v1687_v8  ;;  %v732_v58 = vpop.f32.mrb[29].mxu1  ;;  %v864_v22 = vsel %vm67_vm0, %v778_v20, 0.0 }
 0x1ef   :  { %853 = vadd.xlane.f32.xlu1 %v852_v52  ;;  %v1847_v0 = vadd.f32 %v1687_v8, %v732_v58 }
 0x1f0   :  { %823 = vadd.xlane.f32.xlu0 %v822_v61  ;;  %v780_v25 = vmul.f32 %v1837_v57, %v1837_v57 }
 0x1f1   :  { %v1332_v4 = vpop.f32.mrb[30].mxu1  ;;  %v779_v29 = vmul.f32 %v1847_v0, %v1847_v0 }
 0x1f2   :  { %v1853_v5 = vadd.f32 %v1332_v4, %v1687_v8  ;;  %v742_v47 = vpop.f32.mrb[31].mxu1  ;;  %v870_v27 = vsel %vm67_vm0, %v780_v25, 0.0 }
 0x1f3   :  { %850 = vadd.xlane.f32.xlu1 %v849_v2  ;;  %v1859_v12 = vadd.f32 %v1687_v8, %v742_v47  ;;  %v777_v8 = vmul.f32 %v1828_v51, %v1828_v51  ;;  %v867_v30 = vsel %vm67_vm0, %v779_v29, 0.0 }
 0x1f4   :  { %826 = vadd.xlane.f32.xlu0 %v825_v6  ;;  %v782_v32 = vmul.f32 %v1853_v5, %v1853_v5 }
 0x1f5   :  { %v861_v23 = vsel %vm67_vm0, %v777_v8, 0.0  ;;  %v781_v36 = vmul.f32 %v1859_v12, %v1859_v12 }
 0x1f6   :  { %v876_v34 = vsel %vm67_vm0, %v782_v32, 0.0 }
 0x1f7   :  { %859 = vadd.xlane.f32.xlu1 %v858_v13  ;;  %v873_v40 = vsel %vm67_vm0, %v781_v36, 0.0 }
 0x1f8   :  { %829 = vadd.xlane.f32.xlu0 %v828_v17 }
 0x1fb   :  { %856 = vadd.xlane.f32.xlu1 %v855_v19 }
 0x1ff   :  { %865 = vadd.xlane.f32.xlu1 %v864_v22 }
 0x203   :  { %862 = vadd.xlane.f32.xlu1 %v861_v23 }
 0x207   :  { %871 = vadd.xlane.f32.xlu1 %v870_v27 }
 0x20b   :  { %868 = vadd.xlane.f32.xlu1 %v867_v30 }
 0x20f   :  { %877 = vadd.xlane.f32.xlu1 %v876_v34 }
 0x213   :  { %874 = vadd.xlane.f32.xlu1 %v873_v40 }
 0x248   :  { %v788_v41 = vpop.xlane.xlu1 %787 }
 0x249   :  { %v880_v43 = vmax.f32 %v788_v41, 1e-24  ;;  %v785_v46 = vpop.xlane.xlu0 %784 }
 0x24a   :  { %v879_v50 = vmax.f32 %v785_v46, 1e-24 }
 0x24b   :  { %1344 = vrsqrt.f32 %v880_v43 }
 0x24c   :  { %1346 = vrsqrt.f32 %v879_v50 }
 0x24d   :  { %v794_v52 = vpop.xlane.xlu0 %793 }
 0x24e   :  { %v882_v56 = vmax.f32 %v794_v52, 1e-24 }
 0x250   :  { %1348 = vrsqrt.f32 %v882_v56 }
 0x251   :  { %v791_v48 = vpop.xlane.xlu0 %790 }
 0x252   :  { %v881_v58 = vmax.f32 %v791_v48, 1e-24 }
 0x254   :  { %1350 = vrsqrt.f32 %v881_v58 }
 0x255   :  { %v1345_v61 = vpop.eup %1344  ;;  %v800_v62 = vpop.xlane.xlu0 %799 }
 0x256   :  { %v1347_v2 = vpop.eup %1346  ;;  %v884_v3 = vmax.f32 %v800_v62, 1e-24  ;;  %v944_v4 = vmul.f32 %v1345_v61, %v1690_v10 }
 0x257   :  { %v943_v47 = vmul.f32 %v1347_v2, %v1693_v38 }
 0x258   :  { %1352 = vrsqrt.f32 %v884_v3  ;;  %976 = vst.msk [vmem:[%s2074_s6 + $0x8] sm:$0xff] %vm67_vm0, %v944_v4 }
 0x259   :  { %1007 = vxpose.xlu0.b32.start [1/16] (narrow) %v943_v47, 16  ;;  %975 = vst.msk [vmem:[%s2074_s6] sm:$0xff] %vm67_vm0, %v943_v47  ;;  %v797_v6 = vpop.xlane.xlu0 %796 }
 0x25a   :  { %v1349_v9 = vpop.eup %1348  ;;  %v883_v13 = vmax.f32 %v797_v6, 1e-24 }
 0x25b   :  { %v946_v14 = vmul.f32 %v1349_v9, %v1700_v15 }
 0x25c   :  { %1354 = vrsqrt.f32 %v883_v13 }
 0x25d   :  { %1008 = vxpose.xlu0.b32.cont [2/16] (narrow) %v944_v4, 16  ;;  %v806_v10 = vpop.xlane.xlu0 %805  ;;  %978 = vst.msk [vmem:[%s2074_s6 + $0x18] sm:$0xff] %vm67_vm0, %v946_v14 }
 0x25e   :  { %v1351_v38 = vpop.eup %1350  ;;  %v886_v17 = vmax.f32 %v806_v10, 1e-24 }
 0x25f   :  { %v945_v19 = vmul.f32 %v1351_v38, %v1704_v18 }
 0x260   :  { %1356 = vrsqrt.f32 %v886_v17 }
 0x261   :  { %1009 = vxpose.xlu0.b32.cont [3/16] (narrow) %v945_v19, 16  ;;  %977 = vst.msk [vmem:[%s2074_s6 + $0x10] sm:$0xff] %vm67_vm0, %v945_v19  ;;  %v803_v15 = vpop.xlane.xlu0 %802 }
 0x262   :  { %v1353_v20 = vpop.eup %1352  ;;  %v885_v22 = vmax.f32 %v803_v15, 1e-24 }
 0x263   :  { %v948_v8 = vmul.f32 %v1353_v20, %v1711_v24 }
 0x264   :  { %1358 = vrsqrt.f32 %v885_v22 }
 0x265   :  { %1010 = vxpose.xlu0.b32.cont [4/16] (narrow) %v946_v14, 16  ;;  %v812_v23 = vpop.xlane.xlu0 %811  ;;  %980 = vst.msk [vmem:[%s2074_s6 + $0x28] sm:$0xff] %vm67_vm0, %v948_v8 }
 0x266   :  { %v1355_v18 = vpop.eup %1354  ;;  %v888_v25 = vmax.f32 %v812_v23, 1e-24 }
 0x267   :  { %v947_v27 = vmul.f32 %v1355_v18, %v1716_v28 }
 0x268   :  { %1360 = vrsqrt.f32 %v888_v25  ;;  %v836_v29 = vpop.xlane.xlu1 %835 }
 0x269   :  { %v896_v30 = vmax.f32 %v836_v29, 1e-24  ;;  %1011 = vxpose.xlu0.b32.cont [5/16] (narrow) %v947_v27, 16  ;;  %979 = vst.msk [vmem:[%s2074_s6 + $0x20] sm:$0xff] %vm67_vm0, %v947_v27  ;;  %v809_v24 = vpop.xlane.xlu0 %808 }
 0x26a   :  { %v1357_v32 = vpop.eup %1356  ;;  %v887_v34 = vmax.f32 %v809_v24, 1e-24 }
 0x26b   :  { %1362 = vrsqrt.f32 %v896_v30  ;;  %v950_v36 = vmul.f32 %v1357_v32, %v1722_v33 }
 0x26c   :  { %1364 = vrsqrt.f32 %v887_v34  ;;  %v842_v40 = vpop.xlane.xlu1 %841 }
 0x26d   :  { %v898_v41 = vmax.f32 %v842_v40, 1e-24  ;;  %1012 = vxpose.xlu0.b32.cont [6/16] (narrow) %v948_v8, 16  ;;  %v818_v28 = vpop.xlane.xlu0 %817  ;;  %982 = vst.msk [vmem:[%s2074_s6 + $0x38] sm:$0xff] %vm67_vm0, %v950_v36 }
 0x26e   :  { %v1359_v43 = vpop.eup %1358  ;;  %v890_v46 = vmax.f32 %v818_v28, 1e-24 }
 0x26f   :  { %1366 = vrsqrt.f32 %v898_v41  ;;  %v949_v50 = vmul.f32 %v1359_v43, %v1728_v39 }
 0x270   :  { %1368 = vrsqrt.f32 %v890_v46  ;;  %v839_v52 = vpop.xlane.xlu1 %838 }
 0x271   :  { %v897_v56 = vmax.f32 %v839_v52, 1e-24  ;;  %1013 = vxpose.xlu0.b32.cont [7/16] (narrow) %v949_v50, 16  ;;  %981 = vst.msk [vmem:[%s2074_s6 + $0x30] sm:$0xff] %vm67_vm0, %v949_v50  ;;  %v815_v33 = vpop.xlane.xlu0 %814 }
 0x272   :  { %v1361_v48 = vpop.eup %1360  ;;  %v889_v58 = vmax.f32 %v815_v33, 1e-24 }
 0x273   :  { %1370 = vrsqrt.f32 %v897_v56  ;;  %v952_v61 = vmul.f32 %v1361_v48, %v1734_v44 }
 0x274   :  { %1372 = vrsqrt.f32 %v889_v58  ;;  %v848_v62 = vpop.xlane.xlu1 %847 }
 0x275   :  { %v1363_v2 = vpop.eup %1362  ;;  %v900_v3 = vmax.f32 %v848_v62, 1e-24  ;;  %1014 = vxpose.xlu0.b32.cont [8/16] (narrow) %v950_v36, 16  ;;  %v821_v39 = vpop.xlane.xlu0 %820  ;;  %984 = vst.msk [vmem:[%s2074_s6 + $0x48] sm:$0xff] %vm67_vm0, %v952_v61 }
 0x276   :  { %v1365_v4 = vpop.eup %1364  ;;  %v891_v47 = vmax.f32 %v821_v39, 1e-24  ;;  %v1930_v6 = vmul.f32 %v1363_v2, %v1748_v53 }
 0x277   :  { %1374 = vrsqrt.f32 %v900_v3  ;;  %v951_v9 = vmul.f32 %v1365_v4, %v1742_v49 }
 0x278   :  { %1376 = vrsqrt.f32 %v891_v47  ;;  %v845_v44 = vpop.xlane.xlu1 %844  ;;  %992 = vst.msk [vmem:[%s2074_s6 + $0x88] sm:$0xff] %vm67_vm0, %v1930_v6 }
 0x279   :  { %v1367_v13 = vpop.eup %1366  ;;  %v899_v14 = vmax.f32 %v845_v44, 1e-24  ;;  %1015 = vxpose.xlu0.b32.cont [9/16] (narrow) %v951_v9, 16  ;;  %983 = vst.msk [vmem:[%s2074_s6 + $0x40] sm:$0xff] %vm67_vm0, %v951_v9  ;;  %v833_v53 = vpop.xlane.xlu0 %832 }
 0x27a   :  { %v1369_v10 = vpop.eup %1368  ;;  %v895_v38 = vmax.f32 %v833_v53, 1e-24  ;;  %v1943_v49 = vmul.f32 %v1367_v13, %v1759_v60 }
 0x27b   :  { %1378 = vrsqrt.f32 %v899_v14  ;;  %v954_v17 = vmul.f32 %v1369_v10, %v1751_v55 }
 0x27c   :  { %1380 = vrsqrt.f32 %v895_v38  ;;  %v854_v19 = vpop.xlane.xlu1 %853  ;;  %994 = vst.msk [vmem:[%s2074_s6 + $0x98] sm:$0xff] %vm67_vm0, %v1943_v49 }
 0x27d   :  { %v1371_v15 = vpop.eup %1370  ;;  %v902_v20 = vmax.f32 %v854_v19, 1e-24  ;;  %1016 = vxpose.xlu0.b32.cont [10/16] (narrow) %v952_v61, 16  ;;  %v824_v22 = vpop.xlane.xlu0 %823  ;;  %986 = vst.msk [vmem:[%s2074_s6 + $0x58] sm:$0xff] %vm67_vm0, %v954_v17 }
 0x27e   :  { %v1373_v60 = vpop.eup %1372  ;;  %v892_v8 = vmax.f32 %v824_v22, 1e-24  ;;  %v961_v55 = vmul.f32 %v1371_v15, %v1767_v1 }
 0x27f   :  { %1382 = vrsqrt.f32 %v902_v20  ;;  %v953_v23 = vmul.f32 %v1373_v60, %v1763_v63 }
 0x280   :  { %1384 = vrsqrt.f32 %v892_v8  ;;  %v851_v18 = vpop.xlane.xlu1 %850  ;;  %993 = vst.msk [vmem:[%s2074_s6 + $0x90] sm:$0xff] %vm67_vm0, %v961_v55 }
 0x281   :  { %v1375_v25 = vpop.eup %1374  ;;  %v901_v27 = vmax.f32 %v851_v18, 1e-24  ;;  %1017 = vxpose.xlu0.b32.cont [11/16] (narrow) %v953_v23, 16  ;;  %985 = vst.msk [vmem:[%s2074_s6 + $0x50] sm:$0xff] %vm67_vm0, %v953_v23  ;;  %v827_v29 = vpop.xlane.xlu0 %826 }
 0x282   :  { %v1377_v1 = vpop.eup %1376  ;;  %v893_v30 = vmax.f32 %v827_v29, 1e-24  ;;  %v1966_v63 = vmul.f32 %v1375_v25, %v1777_v7 }
 0x283   :  { %1386 = vrsqrt.f32 %v901_v27  ;;  %v955_v24 = vmul.f32 %v1377_v1, %v1780_v11 }
 0x284   :  { %1388 = vrsqrt.f32 %v893_v30  ;;  %v860_v32 = vpop.xlane.xlu1 %859  ;;  %996 = vst.msk [vmem:[%s2074_s6 + $0xa8] sm:$0xff] %vm67_vm0, %v1966_v63 }
 0x285   :  { %v1379_v34 = vpop.eup %1378  ;;  %v904_v36 = vmax.f32 %v860_v32, 1e-24  ;;  %1018 = vxpose.xlu0.b32.cont [12/16] (narrow) %v954_v17, 16  ;;  %v830_v40 = vpop.xlane.xlu0 %829  ;;  %987 = vst.msk [vmem:[%s2074_s6 + $0x60] sm:$0xff] %vm67_vm0, %v955_v24 }
 0x286   :  { %v1381_v7 = vpop.eup %1380  ;;  %v894_v41 = vmax.f32 %v830_v40, 1e-24  ;;  %v963_v11 = vmul.f32 %v1379_v34, %v1787_v16 }
 0x287   :  { %1390 = vrsqrt.f32 %v904_v36  ;;  %v959_v28 = vmul.f32 %v1381_v7, %v1792_v21 }
 0x288   :  { %1392 = vrsqrt.f32 %v894_v41  ;;  %v857_v43 = vpop.xlane.xlu1 %856  ;;  %995 = vst.msk [vmem:[%s2074_s6 + $0xa0] sm:$0xff] %vm67_vm0, %v963_v11 }
 0x289   :  { %v1383_v46 = vpop.eup %1382  ;;  %v903_v50 = vmax.f32 %v857_v43, 1e-24  ;;  %1019 = vxpose.xlu0.b32.cont [13/16] (narrow) %v955_v24, 16  ;;  %1039 = vxpose.xlu1.b32.start [1/16] (narrow) %v959_v28, 16  ;;  %991 = vst.msk [vmem:[%s2074_s6 + $0x80] sm:$0xff] %vm67_vm0, %v959_v28 }
 0x28a   :  { %v1385_v16 = vpop.eup %1384  ;;  %v966_v52 = vmul.f32 %v1383_v46, %v1799_v26 }
 0x28b   :  { %1394 = vrsqrt.f32 %v903_v50  ;;  %v956_v21 = vmul.f32 %v1385_v16, %v1804_v31 }
 0x28c   :  { %v866_v56 = vpop.xlane.xlu1 %865  ;;  %998 = vst.msk [vmem:[%s2074_s6 + $0xb8] sm:$0xff] %vm67_vm0, %v966_v52 }
 0x28d   :  { %v1387_v33 = vpop.eup %1386  ;;  %v906_v48 = vmax.f32 %v866_v56, 1e-24  ;;  %1040 = vxpose.xlu1.b32.cont [2/16] (narrow) %v1930_v6, 16  ;;  %1020 = vxpose.xlu0.b32.cont [14/16] (narrow) %v956_v21, 16  ;;  %988 = vst.msk [vmem:[%s2074_s6 + $0x68] sm:$0xff] %vm67_vm0, %v956_v21 }
 0x28e   :  { %v1389_v26 = vpop.eup %1388  ;;  %v965_v58 = vmul.f32 %v1387_v33, %v1814_v37 }
 0x28f   :  { %1396 = vrsqrt.f32 %v906_v48  ;;  %v957_v31 = vmul.f32 %v1389_v26, %v1822_v45 }
 0x290   :  { %v863_v61 = vpop.xlane.xlu1 %862  ;;  %997 = vst.msk [vmem:[%s2074_s6 + $0xb0] sm:$0xff] %vm67_vm0, %v965_v58 }
 0x291   :  { %v1391_v62 = vpop.eup %1390  ;;  %v905_v2 = vmax.f32 %v863_v61, 1e-24  ;;  %1041 = vxpose.xlu1.b32.cont [3/16] (narrow) %v961_v55, 16  ;;  %1021 = vxpose.xlu0.b32.cont [15/16] (narrow) %v957_v31, 16  ;;  %989 = vst.msk [vmem:[%s2074_s6 + $0x70] sm:$0xff] %vm67_vm0, %v957_v31 }
 0x292   :  { %v1393_v3 = vpop.eup %1392  ;;  %v968_v37 = vmul.f32 %v1391_v62, %v1832_v54 }
 0x293   :  { %1398 = vrsqrt.f32 %v905_v2  ;;  %v958_v45 = vmul.f32 %v1393_v3, %v1841_v59 }
 0x294   :  { %v872_v39 = vpop.xlane.xlu1 %871  ;;  %1000 = vst.msk [vmem:[%s2074_s6 + $0xc8] sm:$0xff] %vm67_vm0, %v968_v37 }
 0x295   :  { %v1395_v4 = vpop.eup %1394  ;;  %v908_v47 = vmax.f32 %v872_v39, 1e-24  ;;  %1042 = vxpose.xlu1.b32.cont [4/16] (narrow) %v1943_v49, 16  ;;  %1022 = vxpose.xlu0.b32.end [16/16] (narrow) %v958_v45, 16  ;;  %990 = vst.msk [vmem:[%s2074_s6 + $0x78] sm:$0xff] %vm67_vm0, %v958_v45 }
 0x296   :  { %v967_v54 = vmul.f32 %v1395_v4, %v1810_v35 }
 0x297   :  { %1400 = vrsqrt.f32 %v908_v47 }
 0x298   :  { %v869_v59 = vpop.xlane.xlu1 %868  ;;  %999 = vst.msk [vmem:[%s2074_s6 + $0xc0] sm:$0xff] %vm67_vm0, %v967_v54 }
 0x299   :  { %v1397_v6 = vpop.eup %1396  ;;  %v907_v9 = vmax.f32 %v869_v59, 1e-24  ;;  %1043 = vxpose.xlu1.b32.cont [5/16] (narrow) %v963_v11, 16 }
 0x29a   :  { %v970_v44 = vmul.f32 %v1397_v6, %v1819_v42 }
 0x29b   :  { %1402 = vrsqrt.f32 %v907_v9 }
 0x29c   :  { %v878_v13 = vpop.xlane.xlu1 %877  ;;  %1002 = vst.msk [vmem:[%s2074_s6 + $0xd8] sm:$0xff] %vm67_vm0, %v970_v44 }
 0x29d   :  { %v1399_v35 = vpop.eup %1398  ;;  %v910_v14 = vmax.f32 %v878_v13, 1e-24  ;;  %1044 = vxpose.xlu1.b32.cont [6/16] (narrow) %v1966_v63, 16 }
 0x29e   :  { %v969_v53 = vmul.f32 %v1399_v35, %v1828_v51 }
 0x29f   :  { %1404 = vrsqrt.f32 %v910_v14 }
 0x2a0   :  { %v875_v10 = vpop.xlane.xlu1 %874  ;;  %1001 = vst.msk [vmem:[%s2074_s6 + $0xd0] sm:$0xff] %vm67_vm0, %v969_v53 }
 0x2a1   :  { %v1401_v42 = vpop.eup %1400  ;;  %v909_v38 = vmax.f32 %v875_v10, 1e-24  ;;  %1045 = vxpose.xlu1.b32.cont [7/16] (narrow) %v965_v58, 16 }
 0x2a2   :  { %v972_v49 = vmul.f32 %v1401_v42, %v1837_v57 }
 0x2a3   :  { %1406 = vrsqrt.f32 %v909_v38 }
 0x2a4   :  { %1004 = vst.msk [vmem:[%s2074_s6 + $0xe8] sm:$0xff] %vm67_vm0, %v972_v49 }
 0x2a5   :  { %v1403_v17 = vpop.eup %1402  ;;  %1046 = vxpose.xlu1.b32.cont [8/16] (narrow) %v966_v52, 16 }
 0x2a6   :  { %v971_v51 = vmul.f32 %v1403_v17, %v1847_v0 }
 0x2a8   :  { %1003 = vst.msk [vmem:[%s2074_s6 + $0xe0] sm:$0xff] %vm67_vm0, %v971_v51 }
 0x2a9   :  { %v1405_v19 = vpop.eup %1404  ;;  %1047 = vxpose.xlu1.b32.cont [9/16] (narrow) %v967_v54, 16 }
 0x2aa   :  { %v974_v15 = vmul.f32 %v1405_v19, %v1853_v5 }
 0x2ac   :  { %1006 = vst.msk [vmem:[%s2074_s6 + $0xf8] sm:$0xff] %vm67_vm0, %v974_v15 }
 0x2ad   :  { %v1407_v57 = vpop.eup %1406  ;;  %1048 = vxpose.xlu1.b32.cont [10/16] (narrow) %v968_v37, 16 }
 0x2ae   :  { %v973_v20 = vmul.f32 %v1407_v57, %v1859_v12 }
 0x2b0   :  { %1005 = vst.msk [vmem:[%s2074_s6 + $0xf0] sm:$0xff] %vm67_vm0, %v973_v20 }
 0x2b1   :  { %1049 = vxpose.xlu1.b32.cont [11/16] (narrow) %v969_v53, 16 }
 0x2b5   :  { %1050 = vxpose.xlu1.b32.cont [12/16] (narrow) %v970_v44, 16 }
 0x2b9   :  { %1051 = vxpose.xlu1.b32.cont [13/16] (narrow) %v971_v51, 16 }
 0x2bd   :  { %1052 = vxpose.xlu1.b32.cont [14/16] (narrow) %v972_v49, 16 }
 0x2c1   :  { %1053 = vxpose.xlu1.b32.cont [15/16] (narrow) %v973_v20, 16 }
 0x2c5   :  { %1054 = vxpose.xlu1.b32.end [16/16] (narrow) %v974_v15, 16 }
 0x2d9   :  { %v1023_v0 = vpop.trf.xlu0 }
 0x2da   :  { %1071 = vst [vmem:[#allocation2] sm:$0xff] %v1023_v0 }
 0x2dd   :  { %v1024_v5 = vpop.trf.xlu0 }
 0x2de   :  { %1073 = vst [vmem:[#allocation2 + $0x10] sm:$0xff] %v1024_v5 }
 0x309   :  { %v1055_v22 = vpop.trf.xlu1 }
 0x30a   :  { %1072 = vst [vmem:[#allocation2 + $0x8] sm:$0xff] %v1055_v22 }
 0x30d   :  { %v1056_v12 = vpop.trf.xlu1 }
 0x30e   :  { %1074 = vst [vmem:[#allocation2 + $0x18] sm:$0xff] %v1056_v12 }
 0x30f   :  { %1419 = shalt.err (!%p1416_p4)
}
 0x310   :  { %s1420_s9 = scalar_lea.hbm %s2075_s7, 512 }
 0x311   :  { %p1421_p5 = scmp.ne.s32.totalorder %s2075_s7, %s1420_s9  ;;  %p1424_p6 = scmp.lt.u32.totalorder %s1420_s9, %s2075_s7 }
 0x313   :  { %p1426_p7 = pnand %p1424_p6, %p1421_p5 }
 0x315   :  { %1429 = shalt.err (!%p1426_p7)
}
 0x316   :  { %s1433_s13 = smov 256   ;;  %s1434_s14 = smov 16  }
 0x317   :  { %1088 = dma.vmem_to_hbm [thread:$0]  %s1083_s29, 512, %s2075_s7, [#allocation3], %s1433_s13, %s1433_s13, %s1434_s14  }
 0x318   :  { %1430 = dma.done.wait [#allocation3], 512  }
 0x319   :  { %1431 = vsyncadd [#allocation3], 4294966784 }
 0x31a   :  { %1094 = vsyncpa [#allocation3], 1 }

</bundles_post_ra>
